<compile_context>
chip_gen: v7x
topology: tpu7x:2x2x1
jax: 0.10.0
libtpu: 0.0.40
codegen_flags: <defaults>
</compile_context>

<pallas_src>
import jax
import jax.numpy as jnp
from jax.experimental import pallas as pl
from jax.experimental.pallas import tpu as pltpu


_TARGET_BLOCK_BYTES = 6 << 20   # ~6 MiB per x/out block (~2 us DMA @ 3.2 TB/s)
_MAX_BLOCK_BYTES = 8 << 20      # hard cap: 2*in + 2*out <= 32 MiB in flight


def _spatial_dropout_kernel(x_ref, mask_ref, o_ref):
    # (b_tile, t_tile, D) * (b_tile, 1, D): f32 mask broadcast over the T tile
    # (sublane broadcast).  Mem-bound, so the f32 upcast / downcast is free.
    x = x_ref[...].astype(jnp.float32)
    o_ref[...] = (x * mask_ref[...]).astype(o_ref.dtype)


def _sublane_granule(dtype):
    # Minimum packing granule along the second-to-last dim per dtype width.
    return {4: 8, 2: 16, 1: 32}.get(jnp.dtype(dtype).itemsize, 8)


def _choose_tiles(B, T, D, dtype):
    """Pick (b_tile, t_tile) so one (b_tile, t_tile, D) block is ~TARGET bytes,
    never exceeds the per-block cap, stays sublane-aligned, and keeps >= 4 grid
    steps on big inputs (v7x megacore)."""
    itemsize = jnp.dtype(dtype).itemsize
    granule = _sublane_granule(dtype)
    row_bytes = D * itemsize                         # one (b=1, t=1) row
    t_min = T if T <= granule else granule           # smallest legal T extent

    # Shrink the batch axis (to a divisor of B) only if even a minimal-T block
    # would exceed the per-block VMEM cap (large B*D models).
    b_tile = B
    while b_tile > 1 and b_tile * t_min * row_bytes > _MAX_BLOCK_BYTES:
        nxt = b_tile - 1
        while nxt > 1 and B % nxt != 0:
            nxt -= 1
        b_tile = nxt
    # NOTE: for pathologically huge D (> ~2M f32 elements) a single sublane-row
    # block can still exceed the cap; a 128-lane D grid axis would be needed.

    # t_tile: as large as fits the target block size (sublane-aligned).
    rows_target = max(1, _TARGET_BLOCK_BYTES // max(1, b_tile * row_bytes))
    if rows_target >= T:
        t_tile = T                                   # full dim -> always legal
    else:
        t_tile = min(T, max(granule, (rows_target // granule) * granule))

    # v7x: the grid axes are the only "parallel" axes; keep >= 4 steps on large
    # inputs so both TensorCores can stream.  v5e/v6e (1 TC) are unaffected.
    total_bytes = B * T * row_bytes
    if (total_bytes >= 2 * _TARGET_BLOCK_BYTES
            and pl.cdiv(B, b_tile) * pl.cdiv(T, t_tile) < 4
            and T >= 4 * granule):
        t_tile = max(granule, ((T // 4) // granule) * granule)

    return b_tile, t_tile


def spatial_dropout(x, drop_prob, key, training=True):
    """Forward pass of Spatial_Dropout for a (B, T, D) input."""
    if (not training) or drop_prob == 0.0:
        return x
    if drop_prob == 1.0:
        return jnp.zeros_like(x)               # noise.fill_(0) path

    B, T, D = x.shape
    keep_prob = 1.0 - float(drop_prob)
    itemsize = jnp.dtype(x.dtype).itemsize

    # (B, 1, D) channel mask in float32: Bernoulli(keep_prob) / keep_prob.
    keep = jax.random.bernoulli(key, p=keep_prob, shape=(B, 1, D))
    mask = keep.astype(jnp.float32) * jnp.float32(1.0 / keep_prob)

    # Lane-density: fold k time steps into the lane axis when D < 128 so the
    # last dim is a full 128-lane multiple.  Free row-major reshape; the mask
    # is tiled k-fold so every folded time step still sees its channel mask.
    k = 1
    if D < 128 and 128 % D == 0 and T % (128 // D) == 0:
        k = 128 // D
    T_eff, D_eff = T // k, D * k
    x_eff = x.reshape(B, T_eff, D_eff) if k > 1 else x
    mask_eff = jnp.tile(mask, (1, 1, k)) if k > 1 else mask

    b_tile, t_tile = _choose_tiles(B, T_eff, D_eff, x.dtype)
    grid = (pl.cdiv(B, b_tile), pl.cdiv(T_eff, t_tile))

    # Explicit scoped-VMEM budget: 2x double-buffered x + 2x out + 2x mask,
    # plus slack.  Stays well under v7x's 64 MiB physical VMEM.
    block_bytes = b_tile * t_tile * D_eff * itemsize
    mask_bytes = b_tile * D_eff * 4
    vmem_limit = int(min(48 << 20,
                         max(32 << 20, 4 * block_bytes + 2 * mask_bytes + (4 << 20))))

    cost = pl.CostEstimate(
        flops=B * T * D,
        transcendentals=0,
        bytes_accessed=2 * B * T * D * itemsize + B * D * 4,
    )

    out = pl.pallas_call(
        _spatial_dropout_kernel,
        out_shape=jax.ShapeDtypeStruct((B, T_eff, D_eff), x.dtype),
        grid=grid,
        in_specs=[
            pl.BlockSpec((b_tile, t_tile, D_eff), lambda b, t: (b, t, 0)),  # x
            pl.BlockSpec((b_tile, 1, D_eff), lambda b, t: (b, 0, 0)),       # mask
        ],
        out_specs=pl.BlockSpec((b_tile, t_tile, D_eff), lambda b, t: (b, t, 0)),
        compiler_params=pltpu.CompilerParams(
            dimension_semantics=("parallel", "parallel"),
            vmem_limit_bytes=vmem_limit,
        ),
        cost_estimate=cost,
    )(x_eff, mask_eff)

    return out.reshape(B, T, D) if k > 1 else out


if __name__ == "__main__":
    key = jax.random.PRNGKey(0)
    kx, kmask = jax.random.split(key)

    B, T, D = 2, 8, 32
    x = jax.random.normal(kx, (B, T, D), dtype=jnp.float32)

    drop_prob = 0.5
    out = jax.block_until_ready(spatial_dropout(x, drop_prob, kmask, training=True))
    assert out.shape == x.shape and out.dtype == x.dtype

    # Pure-JAX reference (same PRNG stream as the wrapper).
    keep_prob = 1.0 - drop_prob
    keep = jax.random.bernoulli(kmask, p=keep_prob, shape=(B, 1, D))
    ref = x * (keep.astype(jnp.float32) / keep_prob)
    assert bool(jnp.all(jnp.abs(out - ref) < 1e-6))

    # Spatial-dropout invariant: each (batch, feature) channel is uniformly
    # either dropped or scaled by 1/keep_prob across all time steps.
    ratio = out / jnp.where(x == 0, 1.0, x)
    chan_min, chan_max = ratio.min(axis=1), ratio.max(axis=1)
    assert bool(jnp.all(jnp.abs(chan_max - chan_min) < 1e-5))
    assert bool(jnp.all((jnp.abs(chan_max) < 1e-5)
                        | (jnp.abs(chan_max - 1.0 / keep_prob) < 1e-5)))

    # Identity / all-zero fast paths.
    assert bool(jnp.all(spatial_dropout(x, drop_prob, kmask, training=False) == x))
    assert bool(jnp.all(spatial_dropout(x, 0.0, kmask, training=True) == x))
    assert bool(jnp.all(spatial_dropout(x, 1.0, kmask, training=True) == 0))

    print("KERNEL_OK")
</pallas_src>

<mosaic_0001>
module attributes {stable_mosaic.version = 11 : i64} {
  func.func @_spatial_dropout_kernel(%arg0: i32, %arg1: i32, %arg2: memref<2x2x128xf32, #tpu.memory_space<vmem>>, %arg3: memref<2x1x128xf32, #tpu.memory_space<vmem>>, %arg4: memref<2x2x128xf32, #tpu.memory_space<vmem>>) attributes {dimension_semantics = [#tpu.dimension_semantics<parallel>, #tpu.dimension_semantics<parallel>], iteration_bounds = array<i64: 1, 1>, scalar_prefetch = 0 : i64, scratch_operands = 0 : i64, tpu.core_type = #tpu.core_type<tc>, window_params = [{transform_indices = @transform_0, window_bounds = array<i64: 2, 2, 128>}, {transform_indices = @transform_1, window_bounds = array<i64: 2, 1, 128>}, {transform_indices = @transform_2, window_bounds = array<i64: 2, 2, 128>}]} {
    %c0 = arith.constant 0 : index
    %c0_0 = arith.constant 0 : index
    %c0_1 = arith.constant 0 : index
    %0 = vector.load %arg2[%c0, %c0_0, %c0_1] : memref<2x2x128xf32, #tpu.memory_space<vmem>>, vector<2x2x128xf32>
    %c0_2 = arith.constant 0 : index
    %c0_3 = arith.constant 0 : index
    %c0_4 = arith.constant 0 : index
    %1 = vector.load %arg3[%c0_2, %c0_3, %c0_4] : memref<2x1x128xf32, #tpu.memory_space<vmem>>, vector<2x1x128xf32>
    %2 = vector.broadcast %1 : vector<2x1x128xf32> to vector<2x2x128xf32>
    %3 = arith.mulf %0, %2 : vector<2x2x128xf32>
    %c0_5 = arith.constant 0 : index
    %c0_6 = arith.constant 0 : index
    %c0_7 = arith.constant 0 : index
    %4 = vector.load %arg4[%c0_5, %c0_6, %c0_7] : memref<2x2x128xf32, #tpu.memory_space<vmem>>, vector<2x2x128xf32>
    tpu.vector_store %arg4[%c0_5, %c0_6, %c0_7], %3 {strides = array<i32>} : memref<2x2x128xf32, #tpu.memory_space<vmem>>, vector<2x2x128xf32>,
    return
  }
  func.func @transform_0(%arg0: i32, %arg1: i32) -> (i32, i32, i32) {
    %c0_i32 = arith.constant 0 : i32
    %c0_i32_0 = arith.constant 0 : i32
    return %arg0, %arg1, %c0_i32 : i32, i32, i32
  }
  func.func @transform_1(%arg0: i32, %arg1: i32) -> (i32, i32, i32) {
    %c0_i32 = arith.constant 0 : i32
    %c0_i32_0 = arith.constant 0 : i32
    %c0_i32_1 = arith.constant 0 : i32
    return %arg0, %c0_i32, %c0_i32_0 : i32, i32, i32
  }
  func.func @transform_2(%arg0: i32, %arg1: i32) -> (i32, i32, i32) {
    %c0_i32 = arith.constant 0 : i32
    %c0_i32_0 = arith.constant 0 : i32
    return %arg0, %arg1, %c0_i32 : i32, i32, i32
  }
}

</mosaic_0001>

<bundles_post_ra>
// kernel: tpu_custom_call.1
= control target key start
LH: loop header
LB: loop body
LE: loop exit
PB: predicated region body
PF: predicated region fallthrough
CT: control target
= control target key end

     0   :  { %7 = vsyncpa [#allocation3], 0  ;;  %s172_s0 = inlined_call_operand.hbm [shape: f32[2,2,128], index: 0, kind: input, shape index: {}]   ;;  %s173_s1 = inlined_call_operand.vmem [shape: f32[2,1,128], index: 1, kind: input, shape index: {}]   ;;  %s174_s2 = inlined_call_operand.hbm [shape: f32[2,2,128], index: 2, kind: output, shape index: {}]  }
   0x1   :  { %8 = vsyncpa [#allocation4], 0  ;;  %s117_s9 = smov [#allocation2]   ;;  %s69_s13 = scalar_lea.hbm %s172_s0, 64 }
   0x2   :  { %s14_s10 = sshll.u32 %s117_s9, 4  ;;  %p70_p0 = scmp.ne.s32.totalorder %s172_s0, %s69_s13  ;;  %s15_s10 = int_to_ptr.vmem [resolvable:$true] %s14_s10 }
   0x3   :  { %p73_p1 = scmp.lt.u32.totalorder %s69_s13, %s172_s0 }
   0x5   :  { %p75_p2 = pnand %p73_p1, %p70_p0 }
   0x7   :  { %78 = shalt.err (!%p75_p2)
}
   0x8   :  { %s79_s18 = scalar_lea.vmem %s15_s10, 64  ;;  %p84_p4 = scmp.lt.s32.totalorder %s15_s10, %s15_s10 }
   0x9   :  { %p80_p3 = scmp.ne.s32.totalorder %s15_s10, %s79_s18  ;;  %p85_p5 = scmp.lt.s32.totalorder %s79_s18, %s79_s18 }
   0xb   :  { %p86_p6 = por %p85_p5, %p84_p4 }
   0xd   :  { %p87_p7 = pnand %p86_p6, %p80_p3 }
   0xf   :  { %90 = shalt.err (!%p87_p7)
}
  0x10   :  { %s118_s19 = smov 32   ;;  %s119_s20 = smov 2  }
  0x11   :  { %20 = dma.hbm_to_vmem [thread:$0]  %s172_s0, 64, %s15_s10, [#allocation3], %s118_s19, %s118_s19, %s119_s20  }
  0x12   :  { %113 = dma.done.wait [#allocation3], 64  }
  0x13   :  { %114 = vsyncadd [#allocation3], 4294967232  ;;  %s120_s23 = smov [#allocation5]   ;;  %v26_v0 = vld [vmem:[#allocation2] sm:$0x3] }
  0x14   :  { %s51_s24 = sshll.u32 %s120_s23, 4  ;;  %v63_v1 = vld [vmem:[%s173_s1] ss:$0 sm:$0xff]  ;;  %v27_v2 = vld [vmem:[#allocation2 + $0x2] sm:$0x3]  ;;  %s52_s24 = int_to_ptr.vmem [resolvable:$true] %s51_s24 }
  0x15   :  { %v42_v3 = vmul.f32 %v63_v1, %v26_v0  ;;  %v64_v4 = vld [vmem:[%s173_s1 + $0x1] ss:$0 sm:$0xff]  ;;  %s91_s0 = scalar_lea.vmem %s52_s24, 64  ;;  %p96_p9 = scmp.lt.s32.totalorder %s52_s24, %s52_s24 }
  0x16   :  { %v43_v5 = vmul.f32 %v64_v4, %v27_v2  ;;  %p92_p8 = scmp.ne.s32.totalorder %s52_s24, %s91_s0  ;;  %p97_p10 = scmp.lt.s32.totalorder %s91_s0, %s91_s0 }
  0x17   :  { %44 = vst [vmem:[#allocation5] sm:$0x3] %v42_v3 }
  0x18   :  { %45 = vst [vmem:[#allocation5 + $0x2] sm:$0x3] %v43_v5  ;;  %p98_p11 = por %p97_p10, %p96_p9 }
  0x1a   :  { %p99_p12 = pnand %p98_p11, %p92_p8 }
  0x1c   :  { %102 = shalt.err (!%p99_p12)
}
  0x1d   :  { %s103_s3 = scalar_lea.hbm %s174_s2, 64 }
  0x1e   :  { %p104_p13 = scmp.ne.s32.totalorder %s174_s2, %s103_s3  ;;  %p107_p0 = scmp.lt.u32.totalorder %s103_s3, %s174_s2 }
  0x20   :  { %p109_p1 = pnand %p107_p0, %p104_p13 }
  0x22   :  { %112 = shalt.err (!%p109_p1)
}
  0x23   :  { %57 = dma.vmem_to_hbm [thread:$0]  %s52_s24, 64, %s174_s2, [#allocation4], %s118_s19, %s118_s19, %s119_s20  }
  0x24   :  { %115 = dma.done.wait [#allocation4], 64  }
  0x25   :  { %116 = vsyncadd [#allocation4], 4294967232 }
  0x26   :  { %61 = vsyncpa [#allocation3], 1 }
  0x27   :  { %62 = vsyncpa [#allocation4], 1 }

</bundles_post_ra>
